<compile_context>
chip_gen: v5e
topology: v5e:2x2
jax: 0.10.0
libtpu: 0.0.40
codegen_flags: <defaults>
</compile_context>

<pallas_src>
import functools

import jax
import jax.numpy as jnp
from jax.experimental import pallas as pl
from jax.experimental.pallas import tpu as pltpu

_LANE = 128          # pad hidden/output widths to this -> unmasked, lane-dense stores
_SUBLANE = 8         # row tiles must be multiples of 8
_MAX_ROW_TILE = 512  # 256-1024 is the measured sweet spot; 512 ~85% of HBM roofline


# ---------------------------------------------------------------------------
# small helpers
# ---------------------------------------------------------------------------

def _round_up(x, m):
    return ((x + m - 1) // m) * m


def _row_tiling(n):
    """Return (padded_rows, row_tile): rows padded to a multiple of the tile so
    the 1-D grid is exact (no dropped trailing rows)."""
    n8 = _round_up(max(n, 1), _SUBLANE)
    tn = min(_MAX_ROW_TILE, n8)
    return _round_up(n8, tn), tn


def _pad_rows(x, n_pad):
    n = x.shape[0]
    return x if n_pad == n else jnp.pad(x, ((0, n_pad - n), (0, 0)))


def _vmem_limit(block_bytes):
    # Rough budget: double-buffered blocks + headroom, clamped to a window that
    # is safe on v7x (64 MiB physical VMEM) as well as v5e/v6e (128 MiB).
    return int(min(max(4 * block_bytes, 16 * 2**20), 48 * 2**20))


# ---------------------------------------------------------------------------
# Pallas kernels
# ---------------------------------------------------------------------------

def _linear_kernel(x_ref, w_ref, b_ref, o_ref, *, apply_relu):
    # y = x @ W + b (optionally ReLU) for one row tile.  Weights are bf16,
    # activations cast to bf16, accumulation in f32 on the MXU.
    y = jnp.dot(x_ref[...].astype(jnp.bfloat16), w_ref[...],
                preferred_element_type=jnp.float32)
    y = y + b_ref[...]
    if apply_relu:
        y = jnp.maximum(y, 0.0)
    o_ref[...] = y.astype(o_ref.dtype)


def _concat_mlp_kernel(*refs, n_feats, two_layers, relu_out):
    # Fused "concat + MLP" for one row tile.
    #   refs = (x_0..x_{F-1}, W1_0..W1_{F-1}, b1[, W2, b2], out)
    # Concat is fused into the first matmul: h = sum_i x_i @ W1[rows_i] + b1.
    x_refs = refs[:n_feats]
    w1_refs = refs[n_feats:2 * n_feats]
    b1_ref = refs[2 * n_feats]
    if two_layers:
        w2_ref, b2_ref, o_ref = refs[2 * n_feats + 1:2 * n_feats + 4]
    else:
        o_ref = refs[2 * n_feats + 1]

    h = jnp.dot(x_refs[0][...].astype(jnp.bfloat16), w1_refs[0][...],
                preferred_element_type=jnp.float32)
    for i in range(1, n_feats):
        h = h + jnp.dot(x_refs[i][...].astype(jnp.bfloat16), w1_refs[i][...],
                        preferred_element_type=jnp.float32)
    h = h + b1_ref[...]

    if two_layers:
        h = jnp.maximum(h, 0.0)                       # ReLU between layers
        y = jnp.dot(h.astype(jnp.bfloat16), w2_ref[...],
                    preferred_element_type=jnp.float32)
        y = y + b2_ref[...]
    else:
        y = h
    if relu_out:
        y = jnp.maximum(y, 0.0)
    o_ref[...] = y.astype(o_ref.dtype)


# ---------------------------------------------------------------------------
# pallas_call wrappers
# ---------------------------------------------------------------------------

def pallas_linear(x, w, b, *, apply_relu=False, out_width=None):
    """y = x @ W + b (+ReLU).  W is bf16 [d_in, d_out_pad] (d_out_pad % 128 == 0),
    b is f32 [1, d_out_pad].  Returns f32 [n, out_width or d_out_pad]."""
    n, d_in = x.shape
    d_out_pad = w.shape[1]
    n_pad, tn = _row_tiling(n)
    xp = _pad_rows(x, n_pad)
    grid = (n_pad // tn,)

    blk_bytes = tn * d_in * 4 + d_in * d_out_pad * 2 + d_out_pad * 4 + tn * d_out_pad * 4
    flops = 2 * n_pad * d_in * d_out_pad
    bytes_acc = n_pad * d_in * 4 + d_in * d_out_pad * 2 + d_out_pad * 4 + n_pad * d_out_pad * 4

    out = pl.pallas_call(
        functools.partial(_linear_kernel, apply_relu=apply_relu),
        out_shape=jax.ShapeDtypeStruct((n_pad, d_out_pad), jnp.float32),
        grid=grid,
        in_specs=[
            pl.BlockSpec((tn, d_in), lambda i: (i, 0)),
            pl.BlockSpec((d_in, d_out_pad), lambda i: (0, 0)),
            pl.BlockSpec((1, d_out_pad), lambda i: (0, 0)),
        ],
        out_specs=pl.BlockSpec((tn, d_out_pad), lambda i: (i, 0)),
        compiler_params=pltpu.CompilerParams(
            dimension_semantics=("parallel",),
            vmem_limit_bytes=_vmem_limit(blk_bytes)),
        cost_estimate=pl.CostEstimate(flops=int(flops), transcendentals=0,
                                      bytes_accessed=int(bytes_acc)),
    )(xp, w, b)

    if out_width is None:
        return out[:n]
    return out[:n, :out_width]


def pallas_concat_mlp(feats, w1_slices, b1, w2=None, b2=None, *,
                      relu_out=False, out_width=None):
    """Fused concat + (1 or 2 layer) MLP.

    feats:      list of f32 [n, d_i] feature arrays (concat is fused, never
                materialized in HBM).
    w1_slices:  bf16 [d_i, d_hid_pad] row-slices of the first layer's weight.
    b1:         f32 [1, d_hid_pad].
    w2, b2:     optional second layer (bf16 [d_hid_pad, d_out_pad], f32 bias).
    """
    n = feats[0].shape[0]
    n_pad, tn = _row_tiling(n)
    feats_p = [_pad_rows(f, n_pad) for f in feats]
    n_feats = len(feats_p)
    d_hid_pad = w1_slices[0].shape[1]
    two_layers = w2 is not None
    d_out_pad = w2.shape[1] if two_layers else d_hid_pad
    grid = (n_pad // tn,)

    d_in = sum(int(f.shape[1]) for f in feats_p)
    blk_bytes = tn * d_in * 4 + d_in * d_hid_pad * 2 + d_hid_pad * 4 + tn * d_out_pad * 4
    flops = 2 * n_pad * d_in * d_hid_pad
    bytes_acc = n_pad * d_in * 4 + d_in * d_hid_pad * 2 + d_hid_pad * 4 + n_pad * d_out_pad * 4
    if two_layers:
        blk_bytes += d_hid_pad * d_out_pad * 2 + d_out_pad * 4
        flops += 2 * n_pad * d_hid_pad * d_out_pad
        bytes_acc += d_hid_pad * d_out_pad * 2 + d_out_pad * 4

    in_specs = []
    args = []
    for f in feats_p:
        in_specs.append(pl.BlockSpec((tn, int(f.shape[1])), lambda i: (i, 0)))
        args.append(f)
    for wsl in w1_slices:
        in_specs.append(pl.BlockSpec((int(wsl.shape[0]), d_hid_pad), lambda i: (0, 0)))
        args.append(wsl)
    in_specs.append(pl.BlockSpec((1, d_hid_pad), lambda i: (0, 0)))
    args.append(b1)
    if two_layers:
        in_specs.append(pl.BlockSpec((d_hid_pad, d_out_pad), lambda i: (0, 0)))
        in_specs.append(pl.BlockSpec((1, d_out_pad), lambda i: (0, 0)))
        args += [w2, b2]

    # TODO(synk): for very large hidden sizes on v7x (64 MiB VMEM), tile the
    # hidden/K dimension with a trailing "arbitrary" grid axis + f32 accumulator
    # instead of keeping full W1/W2 resident.
    out = pl.pallas_call(
        functools.partial(_concat_mlp_kernel, n_feats=n_feats,
                          two_layers=two_layers, relu_out=relu_out),
        out_shape=jax.ShapeDtypeStruct((n_pad, d_out_pad), jnp.float32),
        grid=grid,
        in_specs=in_specs,
        out_specs=pl.BlockSpec((tn, d_out_pad), lambda i: (i, 0)),
        compiler_params=pltpu.CompilerParams(
            dimension_semantics=("parallel",),
            vmem_limit_bytes=_vmem_limit(blk_bytes)),
        cost_estimate=pl.CostEstimate(flops=int(flops), transcendentals=0,
                                      bytes_accessed=int(bytes_acc)),
    )(*args)

    if out_width is None:
        return out[:n]
    return out[:n, :out_width]


# ---------------------------------------------------------------------------
# Parameters / module wrapper (construction is glue; compute goes through Pallas)
# ---------------------------------------------------------------------------

def _make_linear(key, d_in, d_out, d_out_pad, *, in_pad=None, dtype=jnp.float32):
    """PyTorch nn.Linear-style init U(-1/sqrt(d_in), 1/sqrt(d_in)).
    Stored zero-padded to (in_pad, d_out_pad); W in bf16, b in f32."""
    in_pad = d_in if in_pad is None else in_pad
    kw, kb = jax.random.split(key)
    bound = 1.0 / (d_in ** 0.5)
    w = jax.random.uniform(kw, (d_in, d_out), dtype, -bound, bound)
    b = jax.random.uniform(kb, (1, d_out), dtype, -bound, bound)
    w = jnp.pad(w, ((0, in_pad - d_in), (0, d_out_pad - d_out)))
    b = jnp.pad(b, ((0, 0), (0, d_out_pad - d_out)))
    return w.astype(jnp.bfloat16), b


class MLPFeatureTransformerPallas:
    """JAX/Pallas re-implementation of neptuneml MLPFeatureTransformer.

    dropout_rate accepted for API parity; at inference dropout is the identity,
    which is what we compute.
    # TODO(synk): training-mode dropout, dict-valued num_layers and
    # per-layer hidden_units lists are not implemented.
    """

    def __init__(self, in_units, out_units, num_layers=1, per_feat_name=False,
                 out_unit_per_feat=16, dropout_rate=0.0, hidden_units=None,
                 bias=True, *, key):
        assert bias, "only bias=True is implemented in this synthetic kernel"
        self.in_units = in_units
        self.out_units = out_units
        self.num_layers = num_layers
        self.per_feat_name = per_feat_name
        self.out_unit_per_feat = out_unit_per_feat

        self.per_feat_params = {}   # (ntype, feat_name) -> (W_bf16, b_f32)
        self.ntype_params = {}      # ntype -> dict(layers, w1_slices, concat_dims)

        out_pf_pad = _round_up(out_unit_per_feat, _LANE)

        for ntype, feature_dims in in_units.items():
            in_size = 0
            concat_dims = []
            for feat_name, feat_dim in feature_dims.items():
                if per_feat_name:
                    key, sub = jax.random.split(key)
                    self.per_feat_params[(ntype, feat_name)] = _make_linear(
                        sub, feat_dim, out_unit_per_feat, out_pf_pad)
                    concat_dims.append((feat_name, out_unit_per_feat))
                    in_size += out_unit_per_feat
                else:
                    concat_dims.append((feat_name, feat_dim))
                    in_size += feat_dim

            hidden = in_size if hidden_units is None else hidden_units
            layers = []
            d_prev_real = in_size
            d_prev_pad = in_size            # layer 0 consumes real concat width (fused)
            for li in range(num_layers):
                d_next_real = out_units if li == num_layers - 1 else hidden
                d_next_pad = _round_up(d_next_real, _LANE)
                key, sub = jax.random.split(key)
                w, b = _make_linear(sub, d_prev_real, d_next_real, d_next_pad,
                                    in_pad=d_prev_pad)
                layers.append({"w": w, "b": b,
                               "d_in": d_prev_real, "d_out": d_next_real})
                d_prev_real = d_next_real
                d_prev_pad = d_next_pad

            # split layer-0 weight rows per feature name for the fused-concat kernel
            w1_slices = {}
            off = 0
            for feat_name, dim in concat_dims:
                w1_slices[feat_name] = layers[0]["w"][off:off + dim, :]
                off += dim

            self.ntype_params[ntype] = {"layers": layers,
                                        "w1_slices": w1_slices,
                                        "concat_dims": concat_dims}

    # -- forward (Pallas) ----------------------------------------------------

    def __call__(self, x):
        h = {}
        for ntype in x:
            params = self.ntype_params[ntype]
            layers = params["layers"]
            names, feats = [], []
            for feat_name, feat in x[ntype].items():
                if self.per_feat_name:
                    w, b = self.per_feat_params[(ntype, feat_name)]
                    feat = pallas_linear(feat, w, b, apply_relu=False,
                                         out_width=self.out_unit_per_feat)
                names.append(feat_name)
                feats.append(feat)
            w1_slices = [params["w1_slices"][nm] for nm in names]
            b1 = layers[0]["b"]

            if len(layers) == 1:
                out = pallas_concat_mlp(feats, w1_slices, b1,
                                        out_width=self.out_units)
            elif len(layers) == 2:
                out = pallas_concat_mlp(feats, w1_slices, b1,
                                        w2=layers[1]["w"], b2=layers[1]["b"],
                                        relu_out=False,
                                        out_width=self.out_units)
            else:
                # fused first two layers (both followed by ReLU), then chain
                z = pallas_concat_mlp(feats, w1_slices, b1,
                                      w2=layers[1]["w"], b2=layers[1]["b"],
                                      relu_out=True, out_width=None)
                for li in range(2, len(layers)):
                    is_last = li == len(layers) - 1
                    z = pallas_linear(z, layers[li]["w"], layers[li]["b"],
                                      apply_relu=not is_last,
                                      out_width=self.out_units if is_last else None)
                out = z
            h[ntype] = out
        return h

    # -- pure-JAX reference (mimics the kernel's bf16-multiplicand numerics) --

    def reference(self, x):
        h = {}
        for ntype in x:
            params = self.ntype_params[ntype]
            layers = params["layers"]
            names, feats = [], []
            for feat_name, feat in x[ntype].items():
                if self.per_feat_name:
                    w, b = self.per_feat_params[(ntype, feat_name)]
                    feat = (feat.astype(jnp.bfloat16).astype(jnp.float32)
                            @ w.astype(jnp.float32) + b)[:, :self.out_unit_per_feat]
                names.append(feat_name)
                feats.append(feat)
            w0 = jnp.concatenate([params["w1_slices"][nm].astype(jnp.float32)
                                  for nm in names], axis=0)
            z = jnp.concatenate(feats, axis=1)
            for li, layer in enumerate(layers):
                w = w0 if li == 0 else layer["w"].astype(jnp.float32)
                b = layer["b"]
                z = z.astype(jnp.bfloat16).astype(jnp.float32) @ w + b
                if li < len(layers) - 1:
                    z = jnp.maximum(z, 0.0)
            h[ntype] = z[:, :self.out_units]
        return h


# ---------------------------------------------------------------------------
# Demo
# ---------------------------------------------------------------------------

def _check(model, x, num_nodes, out_units, tag):
    out = model(x)
    out = jax.tree_util.tree_map(jax.block_until_ready, out)
    ref = model.reference(x)
    for ntype in out:
        assert out[ntype].shape == (num_nodes[ntype], out_units), (tag, ntype)
        assert jnp.allclose(out[ntype], ref[ntype], atol=1e-4, rtol=1e-4), (tag, ntype)


if __name__ == "__main__":
    key = jax.random.PRNGKey(0)

    # in_units : dict[ntype -> dict[feat_name -> dim]]
    in_units = {
        "user": {"age": 7, "embed": 9},    # concat -> 16
        "item": {"price": 5, "tags": 11},  # concat -> 16
    }
    out_units = 32
    num_nodes = {"user": 16, "item": 8}

    # deterministic example inputs
    x = {}
    for ntype, featdims in in_units.items():
        x[ntype] = {}
        for feat_name, dim in featdims.items():
            key, sub = jax.random.split(key)
            x[ntype][feat_name] = jax.random.normal(
                sub, (num_nodes[ntype], dim), jnp.float32)

    # path 1: per_feat_name=False, 2-layer MLP (fused concat + fused MLP2 kernel)
    key, pkey = jax.random.split(key)
    model = MLPFeatureTransformerPallas(
        in_units, out_units, num_layers=2,
        per_feat_name=False, dropout_rate=0.0, bias=True, key=pkey)
    _check(model, x, num_nodes, out_units, "base")

    # path 2: per_feat_name=True (per-feature linear kernel + fused concat MLP)
    key, pkey = jax.random.split(key)
    model_pf = MLPFeatureTransformerPallas(
        in_units, out_units, num_layers=2,
        per_feat_name=True, out_unit_per_feat=16,
        dropout_rate=0.0, bias=True, key=pkey)
    _check(model_pf, x, num_nodes, out_units, "per_feat")

    print("KERNEL_OK")
</pallas_src>

<mosaic_0001>
module attributes {stable_mosaic.version = 11 : i64} {
  func.func @_concat_mlp_kernel(%arg0: i32, %arg1: memref<16x7xf32, #tpu.memory_space<vmem>>, %arg2: memref<16x9xf32, #tpu.memory_space<vmem>>, %arg3: memref<7x128xbf16, #tpu.memory_space<vmem>>, %arg4: memref<9x128xbf16, #tpu.memory_space<vmem>>, %arg5: memref<1x128xf32, #tpu.memory_space<vmem>>, %arg6: memref<128x128xbf16, #tpu.memory_space<vmem>>, %arg7: memref<1x128xf32, #tpu.memory_space<vmem>>, %arg8: memref<16x128xf32, #tpu.memory_space<vmem>>) attributes {dimension_semantics = [#tpu.dimension_semantics<parallel>], iteration_bounds = array<i64: 1>, scalar_prefetch = 0 : i64, scratch_operands = 0 : i64, tpu.core_type = #tpu.core_type<tc>, window_params = [{transform_indices = @transform_0, window_bounds = array<i64: 16, 7>}, {transform_indices = @transform_1, window_bounds = array<i64: 16, 9>}, {pipeline_mode = #tpu.pipeline_mode<synchronous>, transform_indices = @transform_2, window_bounds = array<i64: 7, 128>}, {pipeline_mode = #tpu.pipeline_mode<synchronous>, transform_indices = @transform_3, window_bounds = array<i64: 9, 128>}, {pipeline_mode = #tpu.pipeline_mode<synchronous>, transform_indices = @transform_4, window_bounds = array<i64: 1, 128>}, {pipeline_mode = #tpu.pipeline_mode<synchronous>, transform_indices = @transform_5, window_bounds = array<i64: 128, 128>}, {pipeline_mode = #tpu.pipeline_mode<synchronous>, transform_indices = @transform_6, window_bounds = array<i64: 1, 128>}, {transform_indices = @transform_7, window_bounds = array<i64: 16, 128>}]} {
    %c0 = arith.constant 0 : index
    %c0_0 = arith.constant 0 : index
    %0 = vector.load %arg1[%c0, %c0_0] : memref<16x7xf32, #tpu.memory_space<vmem>>, vector<16x7xf32>
    %1 = arith.truncf %0 : vector<16x7xf32> to vector<16x7xbf16>
    %c0_1 = arith.constant 0 : index
    %c0_2 = arith.constant 0 : index
    %2 = vector.load %arg3[%c0_1, %c0_2] : memref<7x128xbf16, #tpu.memory_space<vmem>>, vector<7x128xbf16>
    %cst = arith.constant dense<0.000000e+00> : vector<16x128xf32>
    %3 = tpu.matmul %1, %2, %cst {dimension_numbers = #tpu.dot_dimension_numbers<[1], [0], [0], [1], [0, 0, 1, 1], [], []>} : vector<16x7xbf16>, vector<7x128xbf16>, vector<16x128xf32> -> vector<16x128xf32>
    %c0_3 = arith.constant 0 : index
    %c0_4 = arith.constant 0 : index
    %4 = vector.load %arg2[%c0_3, %c0_4] : memref<16x9xf32, #tpu.memory_space<vmem>>, vector<16x9xf32>
    %5 = arith.truncf %4 : vector<16x9xf32> to vector<16x9xbf16>
    %c0_5 = arith.constant 0 : index
    %c0_6 = arith.constant 0 : index
    %6 = vector.load %arg4[%c0_5, %c0_6] : memref<9x128xbf16, #tpu.memory_space<vmem>>, vector<9x128xbf16>
    %cst_7 = arith.constant dense<0.000000e+00> : vector<16x128xf32>
    %7 = tpu.matmul %5, %6, %cst_7 {dimension_numbers = #tpu.dot_dimension_numbers<[1], [0], [0], [1], [0, 0, 1, 1], [], []>} : vector<16x9xbf16>, vector<9x128xbf16>, vector<16x128xf32> -> vector<16x128xf32>
    %8 = arith.addf %3, %7 : vector<16x128xf32>
    %c0_8 = arith.constant 0 : index
    %c0_9 = arith.constant 0 : index
    %9 = vector.load %arg5[%c0_8, %c0_9] : memref<1x128xf32, #tpu.memory_space<vmem>>, vector<1x128xf32>
    %10 = vector.broadcast %9 : vector<1x128xf32> to vector<16x128xf32>
    %11 = arith.addf %8, %10 : vector<16x128xf32>
    %cst_10 = arith.constant 0.000000e+00 : f32
    %12 = vector.broadcast %cst_10 : f32 to vector<16x128xf32>
    %13 = arith.maximumf %11, %12 : vector<16x128xf32>
    %14 = arith.truncf %13 : vector<16x128xf32> to vector<16x128xbf16>
    %c0_11 = arith.constant 0 : index
    %c0_12 = arith.constant 0 : index
    %15 = vector.load %arg6[%c0_11, %c0_12] : memref<128x128xbf16, #tpu.memory_space<vmem>>, vector<128x128xbf16>
    %cst_13 = arith.constant dense<0.000000e+00> : vector<16x128xf32>
    %16 = tpu.matmul %14, %15, %cst_13 {dimension_numbers = #tpu.dot_dimension_numbers<[1], [0], [0], [1], [0, 0, 1, 1], [], []>} : vector<16x128xbf16>, vector<128x128xbf16>, vector<16x128xf32> -> vector<16x128xf32>
    %c0_14 = arith.constant 0 : index
    %c0_15 = arith.constant 0 : index
    %17 = vector.load %arg7[%c0_14, %c0_15] : memref<1x128xf32, #tpu.memory_space<vmem>>, vector<1x128xf32>
    %18 = vector.broadcast %17 : vector<1x128xf32> to vector<16x128xf32>
    %19 = arith.addf %16, %18 : vector<16x128xf32>
    %c0_16 = arith.constant 0 : index
    %c0_17 = arith.constant 0 : index
    %20 = vector.load %arg8[%c0_16, %c0_17] : memref<16x128xf32, #tpu.memory_space<vmem>>, vector<16x128xf32>
    tpu.vector_store %arg8[%c0_16, %c0_17], %19 {strides = array<i32>} : memref<16x128xf32, #tpu.memory_space<vmem>>, vector<16x128xf32>,
    return
  }
  func.func @transform_0(%arg0: i32) -> (i32, i32) {
    %c0_i32 = arith.constant 0 : i32
    %c0_i32_0 = arith.constant 0 : i32
    return %arg0, %c0_i32 : i32, i32
  }
  func.func @transform_1(%arg0: i32) -> (i32, i32) {
    %c0_i32 = arith.constant 0 : i32
    %c0_i32_0 = arith.constant 0 : i32
    return %arg0, %c0_i32 : i32, i32
  }
  func.func @transform_2(%arg0: i32) -> (i32, i32) {
    %c0_i32 = arith.constant 0 : i32
    %c0_i32_0 = arith.constant 0 : i32
    %c0_i32_1 = arith.constant 0 : i32
    return %c0_i32, %c0_i32_0 : i32, i32
  }
  func.func @transform_3(%arg0: i32) -> (i32, i32) {
    %c0_i32 = arith.constant 0 : i32
    %c0_i32_0 = arith.constant 0 : i32
    %c0_i32_1 = arith.constant 0 : i32
    return %c0_i32, %c0_i32_0 : i32, i32
  }
  func.func @transform_4(%arg0: i32) -> (i32, i32) {
    %c0_i32 = arith.constant 0 : i32
    %c0_i32_0 = arith.constant 0 : i32
    %c0_i32_1 = arith.constant 0 : i32
    return %c0_i32, %c0_i32_0 : i32, i32
  }
  func.func @transform_5(%arg0: i32) -> (i32, i32) {
    %c0_i32 = arith.constant 0 : i32
    %c0_i32_0 = arith.constant 0 : i32
    %c0_i32_1 = arith.constant 0 : i32
    return %c0_i32, %c0_i32_0 : i32, i32
  }
  func.func @transform_6(%arg0: i32) -> (i32, i32) {
    %c0_i32 = arith.constant 0 : i32
    %c0_i32_0 = arith.constant 0 : i32
    %c0_i32_1 = arith.constant 0 : i32
    return %c0_i32, %c0_i32_0 : i32, i32
  }
  func.func @transform_7(%arg0: i32) -> (i32, i32) {
    %c0_i32 = arith.constant 0 : i32
    %c0_i32_0 = arith.constant 0 : i32
    return %arg0, %c0_i32 : i32, i32
  }
}

</mosaic_0001>

<bundles_post_ra>
// kernel: tpu_custom_call.1
= control target key start
LH: loop header
LB: loop body
LE: loop exit
PB: predicated region body
PF: predicated region fallthrough
CT: control target
= control target key end

     0   :  { %12 = vsyncpa [#allocation3], 0  ;;  %s450_s0 = inlined_call_operand.vmem [shape: f32[16,7], index: 0, kind: input, shape index: {}]   ;;  %s451_s1 = inlined_call_operand.vmem [shape: f32[16,9], index: 1, kind: input, shape index: {}]   ;;  %s452_s2 = inlined_call_operand.hbm [shape: bf16[7,128], index: 2, kind: input, shape index: {}]   ;;  %s453_s3 = inlined_call_operand.vmem [shape: bf16[9,128], index: 3, kind: input, shape index: {}]   ;;  %s454_s4 = inlined_call_operand.vmem [shape: f32[1,128], index: 4, kind: input, shape index: {}]   ;;  %s455_s5 = inlined_call_operand.hbm [shape: bf16[128,128], index: 5, kind: input, shape index: {}]   ;;  %s456_s6 = inlined_call_operand.vmem [shape: f32[1,128], index: 6, kind: input, shape index: {}]   ;;  %s457_s7 = inlined_call_operand.hbm [shape: f32[16,128], index: 7, kind: output, shape index: {}]  }
   0x1   :  { %13 = vsyncpa [#allocation6], 0 }
   0x2   :  { %14 = vsyncpa [#allocation4], 0  ;;  %s24_s26 = sshll.u32 %s452_s2, 4  ;;  %s369_s27 = smov [#allocation2]   ;;  %s25_s26 = int_to_ptr.hbm [resolvable:$true] %s24_s26 }
   0x3   :  { %s26_s28 = sshll.u32 %s369_s27, 4  ;;  %s38_s8 = sshll.u32 %s455_s5, 4  ;;  %s27_s28 = int_to_ptr.vmem [resolvable:$true] %s26_s28  ;;  %s39_s8 = int_to_ptr.hbm [resolvable:$true] %s38_s8 }
   0x4   :  { %29 = dma.hbm_to_vmem [thread:$0]  %s25_s26, 64, %s27_s28, [#allocation3]  }
   0x5   :  { %s370_s9 = smov [#allocation5]   ;;  %s371_s11 = smov 64  }
   0x6   :  { %s40_s10 = sshll.u32 %s370_s9, 4  ;;  %s372_s12 = smov 4   ;;  %s41_s10 = int_to_ptr.vmem [resolvable:$true] %s40_s10 }
   0x7   :  { %46 = dma.hbm_to_vmem [thread:$0]  %s39_s8, 1024, %s41_s10, [#allocation6], %s371_s11, %s371_s11, %s372_s12  }
   0x8   :  { %363 = dma.done.wait [#allocation3], 64  }
   0x9   :  { %364 = vsyncadd [#allocation3], 4294967232 }
   0xa   :  { %365 = dma.done.wait [#allocation6], 1024  }
   0xb   :  { %366 = vsyncadd [#allocation6], 4294966272  ;;  %vm76_vm0 = vcmask 1043456   ;;  %vm101_vm1 = vcmask 1042432   ;;  %v373_v0 = vmov 65535   ;;  %vm77_vm2 = vcmask 1044480  }
   0xc   :  { %v102_v1 = vsel %vm101_vm1, 4294967295, %v373_v0  ;;  %v78_v2 = vsel %vm76_vm0, 4294967295, %v373_v0  ;;  %v61_v5 = vld [vmem:[#allocation2] sm:$0xf]  ;;  %v272_v7 = vld [vmem:[%s453_s3] sm:$0x10] }
   0xd   :  { %v103_v3 = vsel %vm76_vm0, %v102_v1, 0  ;;  %v79_v4 = vsel %vm77_vm2, %v78_v2, 0  ;;  %v236_v6 = vld [vmem:[%s453_s3] sm:$0xf]  ;;  %v59_v11 = vld [vmem:[%s450_s0 + $0x8] sm:$0xff]  ;;  %vm97_vm3 = vcmask 56320  }
   0xe   :  { %v105_v8 = vand.u32 %v103_v3, %v61_v5  ;;  %v237_v9 = vor.u32 %v272_v7, %v236_v6  ;;  %v58_v10 = vld [vmem:[%s450_s0] sm:$0xff]  ;;  %v63_v14 = vld [vmem:[%s451_s1 + $0x8] sm:$0xff]  ;;  %v279_v18 = vld [vmem:[#allocation5 + $0x30] sm:$0xff]  ;;  %vm72_vm4 = vcmask 72704   ;;  %s374_s24 = smov [#allocation7]   ;;  %s220_s27 = sshll.u32 %s457_s7, 4  ;;  %s221_s27 = int_to_ptr.hbm [resolvable:$true] %s220_s27 }
   0xf   :  { %v62_v12 = vld [vmem:[%s451_s1] sm:$0xff]  ;;  %v60_v13 = vpack.c.bf16 %v59_v11, %v58_v10  ;;  %v278_v19 = vld [vmem:[#allocation5 + $0x28] sm:$0xff]  ;;  %v275_v22 = vld [vmem:[#allocation5 + $0x10] sm:$0xff]  ;;  %s218_s25 = sshll.u32 %s374_s24, 4  ;;  %s375_s28 = smov 128   ;;  %s219_s25 = int_to_ptr.vmem [resolvable:$true] %s218_s25 }
  0x10   :  { %v280_v15 = vld [vmem:[#allocation5 + $0x38] sm:$0xff]  ;;  %114 = vmatpush.bf16.msra.mxu1 %v105_v8  ;;  %v81_v16 = vand.u32 %v237_v9, %v79_v4  ;;  %v64_v17 = vpack.c.bf16 %v63_v14, %v62_v12  ;;  %v277_v20 = vld [vmem:[#allocation5 + $0x20] sm:$0xff]  ;;  %v274_v23 = vld [vmem:[#allocation5 + $0x8] sm:$0xff]  ;;  %s376_s29 = smov 8  }
  0x11   :  { %198 = vmatpush.bf16.msra.mxu2 %v280_v15  ;;  %v276_v21 = vld [vmem:[#allocation5 + $0x18] sm:$0xff]  ;;  %v273_v24 = vld [vmem:[#allocation5] sm:$0xff] }
  0x12   :  { %90 = vmatpush.bf16.msra.mxu0 %v81_v16  ;;  %v289_v28 = vld [vmem:[%s454_s4] ss:$0 sm:$0xff] }
  0x13   :  { %239 = vmatmul.msk.bf16.vlgmr.msra.gmra.mxu1 %vm97_vm3, %v60_v13  ;;  %v290_v37 = vld [vmem:[%s456_s6] ss:$0 sm:$0xff] }
  0x15   :  { %238 = vmatmul.msk.bf16.vlgmr.msra.gmra.mxu0 %vm72_vm4, %v64_v17  ;;  %199 = vmatpush.bf16.msra.mxu2 %v279_v18 }
  0x19   :  { %200 = vmatpush.bf16.msra.mxu2 %v278_v19 }
  0x1d   :  { %201 = vmatpush.bf16.msra.mxu2 %v277_v20 }
  0x21   :  { %202 = vmatpush.bf16.msra.mxu2 %v276_v21 }
  0x25   :  { %203 = vmatpush.bf16.msra.mxu2 %v275_v22 }
  0x29   :  { %204 = vmatpush.bf16.msra.mxu2 %v274_v23 }
  0x2d   :  { %205 = vmatpush.bf16.msra.mxu2 %v273_v24 }
  0x90   :  { %v116_v25 = vpop.f32.mrf.mxu1 }
  0x92   :  { %v92_v26 = vpop.f32.mrf.mxu0 }
  0x93   :  { %v117_v27 = vadd.f32 %v116_v25, %v92_v26 }
  0x95   :  { %v125_v31 = vadd.f32 %v289_v28, %v117_v27 }
  0x97   :  { %v127_v34 = vmax.f32 %v125_v31, 0.0 }
  0x98   :  { %v118_v29 = vpop.f32.mrf.mxu1 }
  0x9a   :  { %v94_v30 = vpop.f32.mrf.mxu0 }
  0x9b   :  { %v119_v32 = vadd.f32 %v118_v29, %v94_v30 }
  0x9d   :  { %v126_v33 = vadd.f32 %v289_v28, %v119_v32 }
  0x9f   :  { %v128_v35 = vmax.f32 %v126_v33, 0.0 }
  0xa1   :  { %v129_v36 = vpack.c.bf16 %v128_v35, %v127_v34 }
  0xa3   :  { %206 = vmatmul.bf16.vlgmr.msra.gmra.mxu2 %v129_v36 }
 0x126   :  { %v207_v38 = vpop.f32.mrf.mxu2 }
 0x127   :  { %v208_v39 = vadd.f32 %v290_v37, %v207_v38 }
 0x129   :  { %212 = vst [vmem:[#allocation7] sm:$0xff] %v208_v39 }
 0x12e   :  { %v209_v40 = vpop.f32.mrf.mxu2 }
 0x12f   :  { %v210_v41 = vadd.f32 %v290_v37, %v209_v40 }
 0x131   :  { %213 = vst [vmem:[#allocation7 + $0x8] sm:$0xff] %v210_v41 }
 0x132   :  { %226 = dma.vmem_to_hbm [thread:$0]  %s219_s25, 256, %s221_s27, [#allocation4], %s375_s28, %s375_s28, %s376_s29  }
 0x133   :  { %367 = dma.done.wait [#allocation4], 256  }
 0x134   :  { %368 = vsyncadd [#allocation4], 4294967040 }
 0x135   :  { %231 = vsyncpa [#allocation3], 1 }
 0x136   :  { %232 = vsyncpa [#allocation6], 1 }
 0x137   :  { %233 = vsyncpa [#allocation4], 1 }

</bundles_post_ra>
